<compile_context>
chip_gen: v7x
topology: tpu7x:2x2x1
jax: 0.10.0
libtpu: 0.0.40
codegen_flags: <defaults>
</compile_context>

<pallas_src>
import jax
import jax.numpy as jnp
from jax.experimental import pallas as pl
from jax.experimental.pallas import tpu as pltpu

EPS = 1e-8
_LANES = 128
_MAX_ROW_TILE = 4096


def _sublane(dtype):
    # minimum sublane multiple per dtype packing
    return {4: 8, 2: 16, 1: 32}.get(jnp.dtype(dtype).itemsize, 8)


def _round_up(x, m):
    return ((x + m - 1) // m) * m


def _hw_params():
    """Generation-aware (vmem_limit_bytes, tile_budget_bytes, is_v7x_class)."""
    kind = ""
    try:
        kind = jax.devices()[0].device_kind.lower()
    except Exception:
        pass
    is_v7 = ("v7" in kind) or ("tpu7" in kind)

    vmem_cap = None
    try:
        vmem_cap = getattr(pltpu.get_tpu_info(), "vmem_capacity_bytes", None)
    except Exception:
        vmem_cap = None
    if not vmem_cap:
        vmem_cap = (64 if is_v7 else 128) * 1024 * 1024
    if is_v7:
        vmem_cap = min(vmem_cap, 64 * 1024 * 1024)  # per-TC VMEM on v7x

    # leave headroom for compiler-internal scratch / DMA descriptors
    vmem_limit = min(int(vmem_cap * 3 // 4), 100 * 1024 * 1024)
    # per-step I/O double-buffers + f32 temps must sit well under the limit
    tile_budget = int(vmem_limit * 5 // 8)
    return vmem_limit, tile_budget, is_v7


def _choose_row_tile(rows, hidden, dtype, tile_budget, multi_core):
    itemsize = jnp.dtype(dtype).itemsize
    sub = _sublane(dtype)
    # per-row VMEM: double-buffered in + out blocks (4 * itemsize bytes/elem)
    # plus at most one materialized f32 copy of the block (4 bytes/elem).
    per_row = hidden * (4 * itemsize + 4)
    max_rows = max(sub, tile_budget // per_row)
    row_tile = max(sub, min(_MAX_ROW_TILE, (max_rows // sub) * sub))
    # never allocate more block rows than the (sublane-rounded) input has
    row_tile = min(row_tile, _round_up(rows, sub))
    if multi_core:
        # keep >= 2 grid steps (when rows allow) so the row axis can be split
        # across v7x's two TensorCores
        half = _round_up(pl.cdiv(rows, 2), sub)
        row_tile = max(sub, min(row_tile, half))
    return row_tile


def _rmsnorm_kernel(x_ref, o_ref):
    # x_ref / o_ref: (row_tile, hidden) block in VMEM
    xf = x_ref[...].astype(jnp.float32)
    mean_sq = jnp.mean(xf * xf, axis=-1, keepdims=True)   # lane reduce (XLU)
    inv = jax.lax.rsqrt(mean_sq + EPS)                     # EUP rsqrt
    # f32 multiply, single downcast at the store (one rounding, like the ref)
    o_ref[...] = (xf * inv).astype(o_ref.dtype)


def rmsnorm_pallas(x2d, row_tile=None):
    rows, hidden = x2d.shape
    dtype = x2d.dtype
    itemsize = jnp.dtype(dtype).itemsize
    vmem_limit, tile_budget, is_v7 = _hw_params()
    if row_tile is None:
        row_tile = _choose_row_tile(rows, hidden, dtype, tile_budget, is_v7)

    n_blocks = pl.cdiv(rows, row_tile)

    # On v7x-class (2 TensorCores) shard the row axis across cores; "parallel"
    # keeps megacore sharding on older 2-TC parts and is codegen-neutral on
    # single-TC v5e/v6e.
    if is_v7 and n_blocks >= 2:
        row_sem = getattr(pltpu, "CORE_PARALLEL", "parallel")
    else:
        row_sem = "parallel"

    return pl.pallas_call(
        _rmsnorm_kernel,
        out_shape=jax.ShapeDtypeStruct((rows, hidden), dtype),
        grid_spec=pltpu.PrefetchScalarGridSpec(
            num_scalar_prefetch=0,
            grid=(n_blocks,),
            in_specs=[pl.BlockSpec((row_tile, hidden), lambda i: (i, 0))],
            out_specs=pl.BlockSpec((row_tile, hidden), lambda i: (i, 0)),
        ),
        compiler_params=pltpu.CompilerParams(
            dimension_semantics=(row_sem,),
            vmem_limit_bytes=vmem_limit,
        ),
        cost_estimate=pl.CostEstimate(
            flops=3 * rows * hidden,
            transcendentals=rows,
            bytes_accessed=2 * rows * hidden * itemsize,
        ),
    )(x2d)


def _rmsnorm_xla(x):
    # fallback for tiny hidden (< 128 lanes): Pallas would pay masked,
    # lane-sparse stores; plain XLA is at the HBM roofline anyway.
    xf = x.astype(jnp.float32)
    inv = jax.lax.rsqrt(jnp.mean(xf * xf, axis=-1, keepdims=True) + EPS)
    return (xf * inv).astype(x.dtype)


def norm_forward(x, norm=True):
    """Equivalent of Norm(norm).forward(x). Normalizes over the last dim."""
    if not norm:
        return x  # nn.Identity
    shape = x.shape
    hidden = shape[-1]
    if hidden < _LANES:
        return _rmsnorm_xla(x)
    x2d = x.reshape(-1, hidden)
    return rmsnorm_pallas(x2d).reshape(shape)


if __name__ == "__main__":
    key = jax.random.PRNGKey(0)
    k1, k2, k3, k4 = jax.random.split(key, 4)

    # --- main kernel test: (batch=2, seq=7, hidden=256) f32; 14 rows is NOT a
    #     multiple of the tile -> exercises the partial-last-block path
    #     (no wrapper-side pad/slice anymore).
    x = jax.random.normal(k1, (2, 7, 256), dtype=jnp.float32)
    y = jax.block_until_ready(norm_forward(x, norm=True))
    ref = x * jax.lax.rsqrt(jnp.mean(x * x, axis=-1, keepdims=True) + EPS)
    assert y.shape == x.shape and y.dtype == x.dtype
    assert jnp.allclose(y, ref, atol=1e-5, rtol=1e-5)

    # --- bf16 path (16-row sublane-aligned tile, f32 math + single downcast) ---
    xb = jax.random.normal(k2, (2, 8, 256), dtype=jnp.bfloat16)
    yb = jax.block_until_ready(norm_forward(xb, norm=True))
    xf = xb.astype(jnp.float32)
    refb = xf * jax.lax.rsqrt(jnp.mean(xf * xf, axis=-1, keepdims=True) + EPS)
    assert yb.dtype == jnp.bfloat16
    assert jnp.allclose(yb.astype(jnp.float32), refb, atol=5e-2, rtol=2e-2)

    # --- multi-block grid test (explicit row_tile=64 -> 4 grid steps) ---
    xm = jax.random.normal(k4, (4, 64, 256), dtype=jnp.float32)
    ym = jax.block_until_ready(
        rmsnorm_pallas(xm.reshape(-1, 256), row_tile=64).reshape(xm.shape))
    refm = xm * jax.lax.rsqrt(jnp.mean(xm * xm, axis=-1, keepdims=True) + EPS)
    assert jnp.allclose(ym, refm, atol=1e-5, rtol=1e-5)

    # --- tiny-hidden path (hidden=32 < 128 lanes -> XLA fallback) ---
    xs = jax.random.normal(k3, (2, 8, 32), dtype=jnp.float32)
    ys = jax.block_until_ready(norm_forward(xs, norm=True))
    refs = xs * jax.lax.rsqrt(jnp.mean(xs * xs, axis=-1, keepdims=True) + EPS)
    assert jnp.allclose(ys, refs, atol=1e-5, rtol=1e-5)

    # --- identity path (norm=False) ---
    y_id = jax.block_until_ready(norm_forward(x, norm=False))
    assert jnp.array_equal(y_id, x)

    print("KERNEL_OK")
</pallas_src>

<mosaic_0001>
module attributes {stable_mosaic.version = 11 : i64} {
  func.func @_rmsnorm_kernel(%arg0: i32, %arg1: memref<16x256xf32, #tpu.memory_space<vmem>>, %arg2: memref<16x256xf32, #tpu.memory_space<vmem>>) attributes {dimension_semantics = [#tpu.dimension_semantics<parallel>], iteration_bounds = array<i64: 1>, scalar_prefetch = 0 : i64, scratch_operands = 0 : i64, tpu.core_type = #tpu.core_type<tc>, window_params = [{transform_indices = @transform_0, window_bounds = array<i64: 16, 256>}, {transform_indices = @transform_1, window_bounds = array<i64: 16, 256>}]} {
    %c0 = arith.constant 0 : index
    %c0_0 = arith.constant 0 : index
    %0 = vector.load %arg1[%c0, %c0_0] : memref<16x256xf32, #tpu.memory_space<vmem>>, vector<16x256xf32>
    %1 = arith.mulf %0, %0 : vector<16x256xf32>
    %cst = arith.constant dense<0.000000e+00> : vector<16xf32>
    %2 = vector.multi_reduction <add>, %1, %cst [1] : vector<16x256xf32> to vector<16xf32>
    %3 = vector.shape_cast %2 : vector<16xf32> to vector<16x1xf32>
    %cst_1 = arith.constant 2.560000e+02 : f32
    %4 = vector.broadcast %cst_1 : f32 to vector<16x1xf32>
    %5 = arith.divf %3, %4 : vector<16x1xf32>
    %cst_2 = arith.constant 9.99999993E-9 : f32
    %6 = vector.broadcast %cst_2 : f32 to vector<16x1xf32>
    %7 = arith.addf %5, %6 : vector<16x1xf32>
    %8 = math.rsqrt %7 : vector<16x1xf32>
    %9 = vector.broadcast %8 : vector<16x1xf32> to vector<16x256xf32>
    %10 = arith.mulf %0, %9 : vector<16x256xf32>
    %c0_3 = arith.constant 0 : index
    %c0_4 = arith.constant 0 : index
    %11 = vector.load %arg2[%c0_3, %c0_4] : memref<16x256xf32, #tpu.memory_space<vmem>>, vector<16x256xf32>
    tpu.vector_store %arg2[%c0_3, %c0_4], %10 {strides = array<i32>} : memref<16x256xf32, #tpu.memory_space<vmem>>, vector<16x256xf32>,
    return
  }
  func.func @transform_0(%arg0: i32) -> (i32, i32) {
    %c0_i32 = arith.constant 0 : i32
    %c0_i32_0 = arith.constant 0 : i32
    return %arg0, %c0_i32 : i32, i32
  }
  func.func @transform_1(%arg0: i32) -> (i32, i32) {
    %c0_i32 = arith.constant 0 : i32
    %c0_i32_0 = arith.constant 0 : i32
    return %arg0, %c0_i32 : i32, i32
  }
}

</mosaic_0001>

<bundles_post_ra>
// kernel: tpu_custom_call.1
= control target key start
LH: loop header
LB: loop body
LE: loop exit
PB: predicated region body
PF: predicated region fallthrough
CT: control target
= control target key end

     0   :  { %6 = vsyncpa [#allocation3], 0  ;;  %s169_s0 = inlined_call_operand.hbm [shape: f32[14,256], index: 0, kind: input, shape index: {}]   ;;  %s170_s1 = inlined_call_operand.hbm [shape: f32[14,256], index: 1, kind: output, shape index: {}]  }
   0x1   :  { %7 = vsyncpa [#allocation4], 0  ;;  %s125_s6 = smov [#allocation2]   ;;  %s77_s10 = scalar_lea.hbm %s169_s0, 512 }
   0x2   :  { %s13_s7 = sshll.u32 %s125_s6, 4  ;;  %p78_p0 = scmp.ne.s32.totalorder %s169_s0, %s77_s10  ;;  %s14_s7 = int_to_ptr.vmem [resolvable:$true] %s13_s7 }
   0x3   :  { %p81_p1 = scmp.lt.u32.totalorder %s77_s10, %s169_s0 }
   0x5   :  { %p83_p2 = pnand %p81_p1, %p78_p0 }
   0x7   :  { %86 = shalt.err (!%p83_p2)
}
   0x8   :  { %s87_s15 = scalar_lea.vmem %s14_s7, 512  ;;  %p92_p4 = scmp.lt.s32.totalorder %s14_s7, %s14_s7 }
   0x9   :  { %p88_p3 = scmp.ne.s32.totalorder %s14_s7, %s87_s15  ;;  %p93_p5 = scmp.lt.s32.totalorder %s87_s15, %s87_s15 }
   0xb   :  { %p94_p6 = por %p93_p5, %p92_p4 }
   0xd   :  { %p95_p7 = pnand %p94_p6, %p88_p3 }
   0xf   :  { %98 = shalt.err (!%p95_p7)
}
  0x10   :  { %s126_s16 = smov 256   ;;  %s127_s17 = smov 16  }
  0x11   :  { %19 = dma.hbm_to_vmem [thread:$0]  %s169_s0, 512, %s14_s7, [#allocation3], %s126_s16, %s126_s16, %s127_s17  }
  0x12   :  { %121 = dma.done.wait [#allocation3], 512  }
  0x13   :  { %122 = vsyncadd [#allocation3], 4294966784  ;;  %v23_v0 = vld [vmem:[#allocation2] sm:$0xff]  ;;  %v24_v1 = vld [vmem:[#allocation2 + $0x8] sm:$0xff]  ;;  %s128_s0 = smov [#allocation5]  }
  0x14   :  { %v25_v2 = vld [vmem:[#allocation2 + $0x10] sm:$0xff]  ;;  %v27_v3 = vmul.f32 %v23_v0, %v23_v0  ;;  %v28_v4 = vmul.f32 %v24_v1, %v24_v1  ;;  %v26_v5 = vld [vmem:[#allocation2 + $0x18] sm:$0xff]  ;;  %s57_s20 = sshll.u32 %s128_s0, 4  ;;  %s58_s20 = int_to_ptr.vmem [resolvable:$true] %s57_s20 }
  0x15   :  { %v29_v6 = vmul.f32 %v25_v2, %v25_v2  ;;  %v30_v7 = vmul.f32 %v26_v5, %v26_v5  ;;  %s99_s21 = scalar_lea.vmem %s58_s20, 512  ;;  %p104_p9 = scmp.lt.s32.totalorder %s58_s20, %s58_s20 }
  0x16   :  { %v31_v8 = vadd.f32 %v28_v4, %v27_v3  ;;  %p100_p8 = scmp.ne.s32.totalorder %s58_s20, %s99_s21  ;;  %p105_p10 = scmp.lt.s32.totalorder %s99_s21, %s99_s21 }
  0x17   :  { %v34_v9 = vadd.f32 %v30_v7, %v29_v6 }
  0x18   :  { %32 = vadd.xlane.f32.xlu0 %v31_v8  ;;  %p106_p11 = por %p105_p10, %p104_p9 }
  0x1a   :  { %p107_p12 = pnand %p106_p11, %p100_p8 }
  0x1c   :  { %35 = vadd.xlane.f32.xlu0 %v34_v9 }
  0xa5   :  { %v33_v10 = vpop.xlane.xlu0 %32 }
  0xa6   :  { %v38_v11 = vmul.f32 0.00390625, %v33_v10 }
  0xa8   :  { %v40_v12 = vadd.f32 1e-08, %v38_v11 }
  0xa9   :  { %v36_v13 = vpop.xlane.xlu0 %35 }
  0xaa   :  { %73 = vrsqrt.f32 %v40_v12  ;;  %v39_v14 = vmul.f32 0.00390625, %v36_v13 }
  0xac   :  { %v41_v15 = vadd.f32 1e-08, %v39_v14 }
  0xae   :  { %75 = vrsqrt.f32 %v41_v15 }
  0xb4   :  { %v74_v16 = vpop.eup %73 }
  0xb5   :  { %v44_v17 = vmul.f32 %v74_v16, %v23_v0  ;;  %v45_v18 = vmul.f32 %v74_v16, %v24_v1 }
  0xb7   :  { %48 = vst [vmem:[#allocation5] sm:$0xff] %v44_v17  ;;  %49 = vst [vmem:[#allocation5 + $0x8] sm:$0xff] %v45_v18 }
  0xb8   :  { %v76_v19 = vpop.eup %75 }
  0xb9   :  { %v46_v20 = vmul.f32 %v76_v19, %v25_v2  ;;  %v47_v21 = vmul.f32 %v76_v19, %v26_v5 }
  0xbb   :  { %50 = vst [vmem:[#allocation5 + $0x10] sm:$0xff] %v46_v20  ;;  %51 = vst [vmem:[#allocation5 + $0x18] sm:$0xff] %v47_v21 }
  0xbc   :  { %110 = shalt.err (!%p107_p12)
}
  0xbd   :  { %s111_s24 = scalar_lea.hbm %s170_s1, 512 }
  0xbe   :  { %p112_p13 = scmp.ne.s32.totalorder %s170_s1, %s111_s24  ;;  %p115_p0 = scmp.lt.u32.totalorder %s111_s24, %s170_s1 }
  0xc0   :  { %p117_p1 = pnand %p115_p0, %p112_p13 }
  0xc2   :  { %120 = shalt.err (!%p117_p1)
}
  0xc3   :  { %63 = dma.vmem_to_hbm [thread:$0]  %s58_s20, 512, %s170_s1, [#allocation4], %s126_s16, %s126_s16, %s127_s17  }
  0xc4   :  { %123 = dma.done.wait [#allocation4], 512  }
  0xc5   :  { %124 = vsyncadd [#allocation4], 4294966784 }
  0xc6   :  { %67 = vsyncpa [#allocation3], 1 }
  0xc7   :  { %68 = vsyncpa [#allocation4], 1 }

</bundles_post_ra>
